<compile_context>
chip_gen: v6e
topology: v6e:2x2x1
jax: 0.10.0
libtpu: 0.0.40
codegen_flags: <defaults>
</compile_context>

<pallas_src>
import jax
import jax.numpy as jnp
from jax.experimental import pallas as pl
from jax.experimental.pallas import tpu as pltpu

_LANE = 128  # TPU lane width (last dim)


def _round_up(x, m):
    return (x + m - 1) // m * m


def _pad_to(a, shape):
    pads = [(0, t - s) for s, t in zip(a.shape, shape)]
    if all(p == (0, 0) for p in pads):
        return a
    return jnp.pad(a, pads)


def _physical_vmem_bytes():
    """Best-effort per-core VMEM capacity; conservative (v7x, 64 MiB) fallback."""
    try:
        info = pltpu.get_tpu_info()
        for attr in ("vmem_capacity_bytes", "vmem_bytes", "vmem_size_bytes"):
            v = getattr(info, attr, None)
            if v:
                return int(v)
    except Exception:
        pass
    return 64 * 1024 * 1024


def _resident_spec(shape):
    """Grid-invariant block (weights/biases): fetched once, single-buffered."""
    index_map = lambda i, _n=len(shape): (0,) * _n
    try:
        return pl.BlockSpec(shape, index_map, pipeline_mode=pl.Buffered(1))
    except TypeError:  # older API without pipeline_mode kwarg
        return pl.BlockSpec(shape, index_map)


# ---------------------------------------------------------------------------
# Kernels
# ---------------------------------------------------------------------------
def _mlp_kernel(x_ref, w1_ref, b1_ref, w2_ref, b2_ref, o_ref):
    """One batch tile: o = relu(x @ w1 + b1) @ w2 + b2 (f32 accumulation)."""
    x = x_ref[...].astype(w1_ref.dtype)          # in-kernel cast (no-op for f32)
    h = jnp.dot(x, w1_ref[...], preferred_element_type=jnp.float32)
    h = jnp.maximum(h + b1_ref[...], 0.0)        # f32 bias + ReLU epilogue (VPU)
    y = jnp.dot(h.astype(w2_ref.dtype), w2_ref[...],
                preferred_element_type=jnp.float32)
    o_ref[...] = (y + b2_ref[...]).astype(o_ref.dtype)


def _mlp_kernel_xc(x_ref, c_ref, wx_ref, wc_ref, b1_ref, w2_ref, b2_ref, o_ref):
    """Concat fused into the first matmul: h = relu(x @ w_x + c @ w_c + b1)."""
    x = x_ref[...].astype(wx_ref.dtype)
    c = c_ref[...].astype(wc_ref.dtype)
    h = jnp.dot(x, wx_ref[...], preferred_element_type=jnp.float32)
    h = h + jnp.dot(c, wc_ref[...], preferred_element_type=jnp.float32)
    h = jnp.maximum(h + b1_ref[...], 0.0)
    y = jnp.dot(h.astype(w2_ref.dtype), w2_ref[...],
                preferred_element_type=jnp.float32)
    o_ref[...] = (y + b2_ref[...]).astype(o_ref.dtype)


# ---------------------------------------------------------------------------
# Wrapper
# ---------------------------------------------------------------------------
def target_model_forward(params, X_target, C_target=None, *,
                         tile_b=512, compute_dtype=None):
    """Pallas implementation of TargetModel.forward.

    params: 'w_enc' [D_in(+D_c), H], 'b_enc' [H], 'w_pred' [H, D_out],
            'b_pred' [D_out].
    compute_dtype: dtype fed to the MXU (pass jnp.bfloat16 for ~2x MXU rate and
                   half the weight traffic when the accuracy budget allows);
                   accumulation, bias+ReLU epilogue and the output stay f32.
    """
    w_enc, b_enc = params["w_enc"], params["b_enc"]
    w_pred, b_pred = params["w_pred"], params["b_pred"]

    B, D_in = X_target.shape
    D_tot, H = w_enc.shape
    D_out = w_pred.shape[1]
    D_c = 0 if C_target is None else C_target.shape[1]
    assert D_tot == D_in + D_c, "encoder weight / input(+covariate) dim mismatch"

    if compute_dtype is None:
        compute_dtype = X_target.dtype           # exact default; bf16 via flag
    itm_c = jnp.dtype(compute_dtype).itemsize
    itm_in = jnp.dtype(X_target.dtype).itemsize

    # ---- feature padding: weights/biases only (activations stay unpadded) ----
    H_p = _round_up(H, _LANE)
    # Tiny heads: keep the unpadded (tile, D_out) output block (masked stores)
    # instead of inflating output HBM writes and adding a post-kernel slice.
    D_out_f = D_out if D_out <= _LANE else _round_up(D_out, _LANE)

    # ---- batch tile: sublane packing depends on the MXU operand dtype ----
    row_align = 8 * max(1, 4 // itm_c)           # 8 (f32) / 16 (bf16) / 32 (8-bit)
    tile = max(row_align, min(_round_up(tile_b, row_align), _round_up(B, row_align)))
    for steps in (4, 2):                         # >=4 steps => 2 per v7x TensorCore
        if pl.cdiv(B, tile) < steps and B >= steps * row_align:
            tile = _round_up(pl.cdiv(B, steps), row_align)
            break
    grid = (pl.cdiv(B, tile),)                   # ragged last block: writes masked

    # ---- pad / cast weights & biases (one-time; biases stay f32) ----
    b1_p = _pad_to(b_enc.astype(jnp.float32).reshape(1, H), (1, H_p))
    w2_p = _pad_to(w_pred.astype(compute_dtype), (H_p, D_out_f))
    b2_p = _pad_to(b_pred.astype(jnp.float32).reshape(1, D_out), (1, D_out_f))

    # ---- VMEM budget: dbl-buffered activations/output, single-buffered weights ----
    weight_bytes = (D_tot * H_p + H_p * D_out_f) * itm_c + (H_p + D_out_f) * 4
    act_bytes = 2 * tile * (D_in + D_c) * itm_in + 2 * tile * D_out_f * 4
    interm_bytes = tile * (H_p + D_out_f + D_in + D_c) * 4
    vmem_est = weight_bytes + act_bytes + interm_bytes
    vmem_cap = int(0.8 * _physical_vmem_bytes()) # ~51 MiB v7x / ~102 MiB v6e,v5e
    assert vmem_est <= vmem_cap, (
        f"resident-weight tiling needs ~{vmem_est / 2**20:.1f} MiB VMEM > "
        f"{vmem_cap / 2**20:.1f} MiB budget; add the H-reduction grid fallback "
        f"(see TODO(synk) above) or shrink tile_b={tile_b}")
    vmem_limit = int(min(max(2 * vmem_est, 32 * 1024 * 1024), vmem_cap))

    cparams = pltpu.CompilerParams(
        dimension_semantics=("parallel",),       # batch tiles shard across v7x TCs
        vmem_limit_bytes=vmem_limit,
    )
    out_shape = jax.ShapeDtypeStruct((B, D_out_f), jnp.float32)
    out_spec = pl.BlockSpec((tile, D_out_f), lambda i: (i, 0))

    if C_target is None:
        w1_p = _pad_to(w_enc.astype(compute_dtype), (D_in, H_p))
        out = pl.pallas_call(
            _mlp_kernel,
            out_shape=out_shape,
            grid_spec=pltpu.PrefetchScalarGridSpec(
                num_scalar_prefetch=0,
                grid=grid,
                in_specs=[
                    pl.BlockSpec((tile, D_in), lambda i: (i, 0)),   # X tile (unpadded)
                    _resident_spec((D_in, H_p)),                    # enc weight
                    _resident_spec((1, H_p)),                       # enc bias
                    _resident_spec((H_p, D_out_f)),                 # pred weight
                    _resident_spec((1, D_out_f)),                   # pred bias
                ],
                out_specs=out_spec,
            ),
            compiler_params=cparams,
        )(X_target, w1_p, b1_p, w2_p, b2_p)
    else:
        # Split encoder weight so the concat happens inside the MXU, not in HBM.
        wx_p = _pad_to(w_enc[:D_in].astype(compute_dtype), (D_in, H_p))
        wc_p = _pad_to(w_enc[D_in:].astype(compute_dtype), (D_c, H_p))
        out = pl.pallas_call(
            _mlp_kernel_xc,
            out_shape=out_shape,
            grid_spec=pltpu.PrefetchScalarGridSpec(
                num_scalar_prefetch=0,
                grid=grid,
                in_specs=[
                    pl.BlockSpec((tile, D_in), lambda i: (i, 0)),   # X tile (unpadded)
                    pl.BlockSpec((tile, D_c), lambda i: (i, 0)),    # C tile (unpadded)
                    _resident_spec((D_in, H_p)),                    # enc weight (X part)
                    _resident_spec((D_c, H_p)),                     # enc weight (C part)
                    _resident_spec((1, H_p)),                       # enc bias
                    _resident_spec((H_p, D_out_f)),                 # pred weight
                    _resident_spec((1, D_out_f)),                   # pred bias
                ],
                out_specs=out_spec,
            ),
            compiler_params=cparams,
        )(X_target, C_target, wx_p, wc_p, b1_p, w2_p, b2_p)

    return out if D_out_f == D_out else out[:, :D_out]


def _reference_forward(params, X_target, C_target=None):
    x_in = X_target if C_target is None else jnp.concatenate([X_target, C_target], -1)
    h = jnp.maximum(x_in @ params["w_enc"] + params["b_enc"], 0.0)
    return h @ params["w_pred"] + params["b_pred"]


if __name__ == "__main__":
    # Small shapes consistent with TargetModel.forward.
    B, D_in, D_c, H, D_out = 16, 32, 8, 32, 4

    key = jax.random.PRNGKey(0)
    k_x, k_c, k_w1, k_w1c, k_b1, k_w2, k_b2 = jax.random.split(key, 7)

    X_target = jax.random.normal(k_x, (B, D_in), dtype=jnp.float32)
    C_target = jax.random.normal(k_c, (B, D_c), dtype=jnp.float32)

    # --- path 1: C_target is None (exact f32 path) ---
    params_nc = {
        "w_enc": jax.random.normal(k_w1, (D_in, H), dtype=jnp.float32) * 0.1,
        "b_enc": jax.random.normal(k_b1, (H,), dtype=jnp.float32) * 0.01,
        "w_pred": jax.random.normal(k_w2, (H, D_out), dtype=jnp.float32) * 0.1,
        "b_pred": jax.random.normal(k_b2, (D_out,), dtype=jnp.float32) * 0.01,
    }
    y = jax.block_until_ready(target_model_forward(params_nc, X_target, None))
    y_ref = _reference_forward(params_nc, X_target, None)
    assert y.shape == (B, D_out)
    assert jnp.allclose(y, y_ref, atol=1e-5, rtol=1e-5), "mismatch (no-C path)"

    # --- path 2: with C_target (concat fused into the kernel, exact f32 path) ---
    params_c = {
        "w_enc": jax.random.normal(k_w1c, (D_in + D_c, H), dtype=jnp.float32) * 0.1,
        "b_enc": params_nc["b_enc"],
        "w_pred": params_nc["w_pred"],
        "b_pred": params_nc["b_pred"],
    }
    y_c = jax.block_until_ready(target_model_forward(params_c, X_target, C_target))
    y_c_ref = _reference_forward(params_c, X_target, C_target)
    assert y_c.shape == (B, D_out)
    assert jnp.allclose(y_c, y_c_ref, atol=1e-5, rtol=1e-5), "mismatch (C path)"

    # --- path 3: bf16 MXU operands (in-kernel cast, f32 accumulate/epilogue) ---
    y_bf = jax.block_until_ready(
        target_model_forward(params_c, X_target, C_target,
                             compute_dtype=jnp.bfloat16))
    assert y_bf.shape == (B, D_out)
    assert jnp.allclose(y_bf, y_c_ref, atol=5e-2, rtol=5e-2), "mismatch (bf16 path)"

    print("KERNEL_OK")
</pallas_src>

<mosaic_0001>
module attributes {stable_mosaic.version = 11 : i64} {
  func.func @_mlp_kernel(%arg0: i32, %arg1: memref<8x32xf32, #tpu.memory_space<vmem>>, %arg2: memref<32x128xf32, #tpu.memory_space<vmem>>, %arg3: memref<1x128xf32, #tpu.memory_space<vmem>>, %arg4: memref<128x4xf32, #tpu.memory_space<vmem>>, %arg5: memref<1x4xf32, #tpu.memory_space<vmem>>, %arg6: memref<8x4xf32, #tpu.memory_space<vmem>>) attributes {dimension_semantics = [#tpu.dimension_semantics<parallel>], iteration_bounds = array<i64: 2>, scalar_prefetch = 0 : i64, scratch_operands = 0 : i64, tpu.core_type = #tpu.core_type<tc>, window_params = [{transform_indices = @transform_0, window_bounds = array<i64: 8, 32>}, {pipeline_mode = #tpu.pipeline_mode<synchronous>, transform_indices = @transform_1, window_bounds = array<i64: 32, 128>}, {pipeline_mode = #tpu.pipeline_mode<synchronous>, transform_indices = @transform_2, window_bounds = array<i64: 1, 128>}, {pipeline_mode = #tpu.pipeline_mode<synchronous>, transform_indices = @transform_3, window_bounds = array<i64: 128, 4>}, {pipeline_mode = #tpu.pipeline_mode<synchronous>, transform_indices = @transform_4, window_bounds = array<i64: 1, 4>}, {transform_indices = @transform_5, window_bounds = array<i64: 8, 4>}]} {
    %c0 = arith.constant 0 : index
    %c0_0 = arith.constant 0 : index
    %0 = vector.load %arg1[%c0, %c0_0] : memref<8x32xf32, #tpu.memory_space<vmem>>, vector<8x32xf32>
    %c0_1 = arith.constant 0 : index
    %c0_2 = arith.constant 0 : index
    %1 = vector.load %arg2[%c0_1, %c0_2] : memref<32x128xf32, #tpu.memory_space<vmem>>, vector<32x128xf32>
    %cst = arith.constant dense<0.000000e+00> : vector<8x128xf32>
    %2 = tpu.matmul %0, %1, %cst {dimension_numbers = #tpu.dot_dimension_numbers<[1], [0], [0], [1], [0, 0, 1, 1], [], []>} : vector<8x32xf32>, vector<32x128xf32>, vector<8x128xf32> -> vector<8x128xf32>
    %c0_3 = arith.constant 0 : index
    %c0_4 = arith.constant 0 : index
    %3 = vector.load %arg3[%c0_3, %c0_4] : memref<1x128xf32, #tpu.memory_space<vmem>>, vector<1x128xf32>
    %4 = vector.broadcast %3 : vector<1x128xf32> to vector<8x128xf32>
    %5 = arith.addf %2, %4 : vector<8x128xf32>
    %cst_5 = arith.constant 0.000000e+00 : f32
    %6 = vector.broadcast %cst_5 : f32 to vector<8x128xf32>
    %7 = arith.maximumf %5, %6 : vector<8x128xf32>
    %c0_6 = arith.constant 0 : index
    %c0_7 = arith.constant 0 : index
    %8 = vector.load %arg4[%c0_6, %c0_7] : memref<128x4xf32, #tpu.memory_space<vmem>>, vector<128x4xf32>
    %cst_8 = arith.constant dense<0.000000e+00> : vector<8x4xf32>
    %9 = tpu.matmul %7, %8, %cst_8 {dimension_numbers = #tpu.dot_dimension_numbers<[1], [0], [0], [1], [0, 0, 1, 1], [], []>} : vector<8x128xf32>, vector<128x4xf32>, vector<8x4xf32> -> vector<8x4xf32>
    %c0_9 = arith.constant 0 : index
    %c0_10 = arith.constant 0 : index
    %10 = vector.load %arg5[%c0_9, %c0_10] : memref<1x4xf32, #tpu.memory_space<vmem>>, vector<1x4xf32>
    %11 = vector.broadcast %10 : vector<1x4xf32> to vector<8x4xf32>
    %12 = arith.addf %9, %11 : vector<8x4xf32>
    %c0_11 = arith.constant 0 : index
    %c0_12 = arith.constant 0 : index
    %13 = vector.load %arg6[%c0_11, %c0_12] : memref<8x4xf32, #tpu.memory_space<vmem>>, vector<8x4xf32>
    tpu.vector_store %arg6[%c0_11, %c0_12], %12 {strides = array<i32>} : memref<8x4xf32, #tpu.memory_space<vmem>>, vector<8x4xf32>,
    return
  }
  func.func @transform_0(%arg0: i32) -> (i32, i32) {
    %c0_i32 = arith.constant 0 : i32
    %c0_i32_0 = arith.constant 0 : i32
    return %arg0, %c0_i32 : i32, i32
  }
  func.func @transform_1(%arg0: i32) -> (i32, i32) {
    %c0_i32 = arith.constant 0 : i32
    %c0_i32_0 = arith.constant 0 : i32
    %c0_i32_1 = arith.constant 0 : i32
    return %c0_i32, %c0_i32_0 : i32, i32
  }
  func.func @transform_2(%arg0: i32) -> (i32, i32) {
    %c0_i32 = arith.constant 0 : i32
    %c0_i32_0 = arith.constant 0 : i32
    %c0_i32_1 = arith.constant 0 : i32
    return %c0_i32, %c0_i32_0 : i32, i32
  }
  func.func @transform_3(%arg0: i32) -> (i32, i32) {
    %c0_i32 = arith.constant 0 : i32
    %c0_i32_0 = arith.constant 0 : i32
    %c0_i32_1 = arith.constant 0 : i32
    return %c0_i32, %c0_i32_0 : i32, i32
  }
  func.func @transform_4(%arg0: i32) -> (i32, i32) {
    %c0_i32 = arith.constant 0 : i32
    %c0_i32_0 = arith.constant 0 : i32
    %c0_i32_1 = arith.constant 0 : i32
    return %c0_i32, %c0_i32_0 : i32, i32
  }
  func.func @transform_5(%arg0: i32) -> (i32, i32) {
    %c0_i32 = arith.constant 0 : i32
    %c0_i32_0 = arith.constant 0 : i32
    return %arg0, %c0_i32 : i32, i32
  }
}

</mosaic_0001>

<bundles_post_ra>
// kernel: tpu_custom_call.1
= control target key start
LH: loop header
LB: loop body
LE: loop exit
PB: predicated region body
PF: predicated region fallthrough
CT: control target
= control target key end

     0   :  { %s585_s18 = smov 0   ;;  %s699_s0 = inlined_call_operand.vmem [shape: f32[16,32], index: 0, kind: input, shape index: {}]   ;;  %s700_s1 = inlined_call_operand.vmem [shape: f32[32,128], index: 1, kind: input, shape index: {}]   ;;  %s701_s2 = inlined_call_operand.vmem [shape: f32[1,128], index: 2, kind: input, shape index: {}]   ;;  %s702_s3 = inlined_call_operand.vmem [shape: f32[128,4], index: 3, kind: input, shape index: {}]   ;;  %s703_s4 = inlined_call_operand.vmem [shape: f32[1,4], index: 4, kind: input, shape index: {}]   ;;  %s704_s5 = inlined_call_operand.vmem [shape: f32[16,4], index: 5, kind: output, shape index: {}]  }
   0x1 LB: > { %s455_s19 = sadd.s32 4294967295, %s551_s18   ;;  %p459_p0 = scmp.ge.s32.totalorder %s551_s18, 1  ;;  %s551_s18 = sphi %s585_s18, %s15_s18  }
   0x2   : > { %p186_p1 = scmp.lt.s32.totalorder %s551_s18, 3 }
   0x4   : > { %p187_p2 = pnand %p459_p0, %p186_p1 }
   0x5   : > { %p212_p3 = scmp.lt.s32.totalorder (!%p187_p2), %s455_s19, 1 }
   0x6   : > { %190 = sbr.rel (%p187_p2) target bundleno = 413 (0x19d), region = 40 }
   0xb   : > { %v224_v0 = vld [vmem:[%s700_s1 + $0x18] sm:$0xff]  ;;  %v553_v1 = vmov 0.0   ;;  %v223_v2 = vld [vmem:[%s700_s1 + $0x10] sm:$0xff]  ;;  %vm554_vm0 = vmmov 0   ;;  %s706_s19 = smov (!%p212_p3, %s455_s19), 1  ;;  %v222_v5 = vld [vmem:[%s700_s1 + $0x8] sm:$0xff] }
   0xc   : > { %489 = vmatprep.subr.mxu0 %v553_v1  ;;  %497 = vmatprep.mubr.msk.f32.mxu0 %vm554_vm0, %v553_v1  ;;  %v322_v3 = vld [vmem:[%s702_s3 + $0x78] sm:$0xff]  ;;  %v321_v4 = vld [vmem:[%s702_s3 + $0x70] sm:$0xff]  ;;  %s460_s30 = sshll.u32 %s706_s19, 3  ;;  %v320_v6 = vld [vmem:[%s702_s3 + $0x68] sm:$0xff]  ;;  %vm232_vm1 = vcmask 261120   ;;  %vm400_vm2 = vcmask 31744  }
   0xd   : > { %490 = vmatpush3.msra.mxu0 %v224_v0  ;;  %500 = vmatprep.subr.mxu1 %v553_v1  ;;  %v221_v7 = vld [vmem:[%s700_s1] sm:$0xff]  ;;  %s215_s12 = scalar_lea.vmem %s699_s0, %s460_s30  ;;  %v318_v10 = vld [vmem:[%s702_s3 + $0x58] sm:$0xff]  ;;  %v317_v11 = vld [vmem:[%s702_s3 + $0x50] sm:$0xff]  ;;  %s219_s25 = scalar_lea.vmem %s704_s5, %s460_s30 }
   0xe   : > { %491 = vmatprep.subr.mxu0 %v553_v1  ;;  %501 = vmatpush3.msra.mxu1 %v322_v3  ;;  %v220_v8 = vld [vmem:[%s215_s12] sm:$0xff]  ;;  %v316_v12 = vld [vmem:[%s702_s3 + $0x48] sm:$0xff]  ;;  %v314_v14 = vld [vmem:[%s702_s3 + $0x38] sm:$0xff] }
   0xf   : > { %492 = vmatpush3.msra.mxu0 %v223_v2  ;;  %502 = vmatprep.subr.mxu1 %v553_v1  ;;  %v319_v9 = vld [vmem:[%s702_s3 + $0x60] sm:$0xff]  ;;  %v313_v15 = vld [vmem:[%s702_s3 + $0x30] sm:$0xff]  ;;  %v312_v16 = vld [vmem:[%s702_s3 + $0x28] sm:$0xff] }
  0x10   : > { %493 = vmatprep.subr.mxu0 %v553_v1  ;;  %503 = vmatpush3.msra.mxu1 %v321_v4  ;;  %v315_v13 = vld [vmem:[%s702_s3 + $0x40] sm:$0xff]  ;;  %v310_v18 = vld [vmem:[%s702_s3 + $0x18] sm:$0xff]  ;;  %v309_v19 = vld [vmem:[%s702_s3 + $0x10] sm:$0xff] }
  0x11   : > { %494 = vmatpush3.msra.mxu0 %v222_v5  ;;  %504 = vmatprep.subr.mxu1 %v553_v1  ;;  %v311_v17 = vld [vmem:[%s702_s3 + $0x20] sm:$0xff]  ;;  %v308_v20 = vld [vmem:[%s702_s3 + $0x8] sm:$0xff] }
  0x12   : > { %495 = vmatprep.subr.mxu0 %v553_v1  ;;  %505 = vmatpush3.msra.mxu1 %v320_v6  ;;  %v307_v21 = vld [vmem:[%s702_s3] sm:$0xff] }
  0x13   : > { %496 = vmatpush3.msra.mxu0 %v221_v7  ;;  %506 = vmatprep.subr.mxu1 %v553_v1  ;;  %v462_v22 = vld [vmem:[%s701_s2] ss:$0 sm:$0xff] }
  0x14   : > { %498 = vmatmul.mubr.msk.f32.vlgmr.msra.gmra.mxu0 %vm232_vm1, %v220_v8  ;;  %507 = vmatpush3.msra.mxu1 %v319_v9  ;;  %v464_v27 = vld [vmem:[%s703_s4] ss:$0 sm:$0xff] }
  0x15   : > { %508 = vmatprep.subr.mxu1 %v553_v1  ;;  %532 = vmatprep.mubr.msk.f32.mxu1 %vm554_vm0, %v553_v1 }
  0x16   : > { %509 = vmatpush3.msra.mxu1 %v318_v10 }
  0x17   : > { %510 = vmatprep.subr.mxu1 %v553_v1 }
  0x18   : > { %511 = vmatpush3.msra.mxu1 %v317_v11 }
  0x19   : > { %512 = vmatprep.subr.mxu1 %v553_v1 }
  0x1a   : > { %513 = vmatpush3.msra.mxu1 %v316_v12 }
  0x1b   : > { %514 = vmatprep.subr.mxu1 %v553_v1 }
  0x1c   : > { %515 = vmatpush3.msra.mxu1 %v315_v13 }
  0x1d   : > { %516 = vmatprep.subr.mxu1 %v553_v1 }
  0x1e   : > { %517 = vmatpush3.msra.mxu1 %v314_v14 }
  0x1f   : > { %518 = vmatprep.subr.mxu1 %v553_v1 }
  0x20   : > { %519 = vmatpush3.msra.mxu1 %v313_v15 }
  0x21   : > { %520 = vmatprep.subr.mxu1 %v553_v1 }
  0x22   : > { %521 = vmatpush3.msra.mxu1 %v312_v16 }
  0x23   : > { %522 = vmatprep.subr.mxu1 %v553_v1 }
  0x24   : > { %523 = vmatpush3.msra.mxu1 %v311_v17 }
  0x25   : > { %524 = vmatprep.subr.mxu1 %v553_v1 }
  0x26   : > { %525 = vmatpush3.msra.mxu1 %v310_v18 }
  0x27   : > { %526 = vmatprep.subr.mxu1 %v553_v1 }
  0x28   : > { %527 = vmatpush3.msra.mxu1 %v309_v19 }
  0x29   : > { %528 = vmatprep.subr.mxu1 %v553_v1 }
  0x2a   : > { %529 = vmatpush3.msra.mxu1 %v308_v20 }
  0x2b   : > { %530 = vmatprep.subr.mxu1 %v553_v1 }
  0x2c   : > { %531 = vmatpush3.msra.mxu1 %v307_v21 }
  0xd4   : > { %v302_v23 = vpop.f32.mrf.mxu0 }
  0xd5   : > { %v303_v24 = vadd.f32 %v462_v22, %v302_v23 }
  0xd6   : > { %v499_v25 = vpop.f32.mrf.mxu0 }
  0xd7   : > { %v306_v26 = vmax.f32 %v303_v24, 0.0 }
  0xd9   : > { %533 = vmatmul.mubr.f32.vlgmr.msra.gmra.mxu1 %v306_v26 }
 0x199   : > { %v396_v28 = vpop.f32.mrf.mxu1 }
 0x19a   : > { %v397_v29 = vadd.f32 %v464_v27, %v396_v28 }
 0x19b   : > { %v534_v30 = vpop.f32.mrf.mxu1 }
 0x19c   : > { %401 = vst.msk [vmem:[%s219_s25] sm:$0xff] %vm400_vm2, %v397_v29 }
 0x19d PF: > { %s15_s18 = sadd.s32 1, %s551_s18  }
 0x19e   : > { %p12_p4 = scmp.ge.s32.totalorder %s15_s18, 4  }
 0x1a0   :  { %14 = sbr.rel (!%p12_p4) target bundleno = 1 (0x1), region = 70 }

</bundles_post_ra>
